<compile_context>
chip_gen: v7x
topology: tpu7x:2x2x1
jax: 0.10.0
libtpu: 0.0.40
codegen_flags: <defaults>
</compile_context>

<pallas_src>
import jax
import jax.numpy as jnp
from jax.experimental import pallas as pl
from jax.experimental.pallas import tpu as pltpu


_SQRT_HALF = 0.7071067811865476


def _erf_poly(x):
    # Abramowitz & Stegun 7.1.26 rational approximation, |error| <= 1.5e-7.
    a1, a2, a3, a4, a5 = (0.254829592, -0.284496736, 1.421413741,
                          -1.453152027, 1.061405429)
    p = 0.3275911
    ax = jnp.abs(x)
    t = 1.0 / (1.0 + p * ax)
    poly = ((((a5 * t + a4) * t + a3) * t + a2) * t + a1) * t
    y = 1.0 - poly * jnp.exp(-ax * ax)
    return jnp.where(x >= 0, y, -y)


def _gelu_exact(x):
    # nn.GELU() (exact erf) semantics, built from Mosaic-supported elementwise ops.
    return 0.5 * x * (1.0 + _erf_poly(x * _SQRT_HALF))


def _make_kernel(num_heads: int, eps: float = 1e-5):
    def kernel(x_ref,                       # (TB, N, E) f32
               wqkv_ref,                    # (E, 3E) bf16, scale folded into Q cols
               wout_ref,                    # (E, E)  bf16
               bout_ref,                    # (1, E)  f32
               g1_ref, b1_ref,              # (1, E)  f32
               g2_ref, b2_ref,              # (1, E)  f32
               wf1_ref, bf1_ref,            # (E, F) bf16, (1, F) f32
               wf2_ref, bf2_ref,            # (F, E) bf16, (1, E) f32
               o_ref,                       # (TB, N, E) f32
               cat_ref):                    # VMEM scratch (TB*N, E) bf16
        tb, n, e = x_ref.shape
        d = e // num_heads
        t = tb * n

        x = x_ref[...].reshape(t, e)                         # (T, E) f32

        # ---------------- LayerNorm 1 (f32) ----------------
        mu = jnp.mean(x, axis=-1, keepdims=True)
        xc = x - mu
        var = jnp.mean(xc * xc, axis=-1, keepdims=True)
        xn1 = xc * jax.lax.rsqrt(var + eps) * g1_ref[...] + b1_ref[...]
        xn1_bf = xn1.astype(jnp.bfloat16)

        # -------- Single full-width QKV projection (MXU, f32 acc) --------
        qkv = jnp.dot(xn1_bf, wqkv_ref[...],
                      preferred_element_type=jnp.float32)    # (T, 3E)

        # -------- Per-head attention core; head outputs -> VMEM concat --------
        for h in range(num_heads):
            lo = h * d
            q3 = qkv[:, lo:lo + d].astype(jnp.bfloat16).reshape(tb, n, d)
            k3 = qkv[:, e + lo:e + lo + d].astype(jnp.bfloat16).reshape(tb, n, d)
            v3 = qkv[:, 2 * e + lo:2 * e + lo + d].astype(jnp.bfloat16).reshape(tb, n, d)

            dots = jnp.einsum('bid,bjd->bij', q3, k3,
                              preferred_element_type=jnp.float32)   # (TB, N, N)
            dots = dots - jnp.max(dots, axis=-1, keepdims=True)
            p = jnp.exp(dots)
            inv = pl.reciprocal(jnp.sum(p, axis=-1, keepdims=True), approx=True)
            p = (p * inv).astype(jnp.bfloat16)

            ho = jnp.einsum('bij,bjd->bid', p, v3,
                            preferred_element_type=jnp.float32)     # (TB, N, d)
            cat_ref[:, lo:lo + d] = ho.reshape(t, d).astype(jnp.bfloat16)

        # -------- Single full-K out projection (MXU, f32 acc) --------
        attn_out = jnp.dot(cat_ref[...], wout_ref[...],
                           preferred_element_type=jnp.float32) + bout_ref[...]
        x1 = x + attn_out                                    # residual 1

        # ---------------- LayerNorm 2 (f32) ----------------
        mu2 = jnp.mean(x1, axis=-1, keepdims=True)
        xc2 = x1 - mu2
        var2 = jnp.mean(xc2 * xc2, axis=-1, keepdims=True)
        xn2 = (xc2 * jax.lax.rsqrt(var2 + eps) * g2_ref[...] + b2_ref[...]
               ).astype(jnp.bfloat16)

        # -------- Feed-forward: Linear -> GELU (exact erf) -> Linear --------
        h1 = jnp.dot(xn2, wf1_ref[...],
                     preferred_element_type=jnp.float32) + bf1_ref[...]   # (T, F)
        h1 = _gelu_exact(h1).astype(jnp.bfloat16)
        ff = jnp.dot(h1, wf2_ref[...],
                     preferred_element_type=jnp.float32) + bf2_ref[...]   # (T, E)

        o_ref[...] = (x1 + ff).reshape(tb, n, e)             # residual 2
    return kernel


def transformer_encoder_block(x, params, num_heads, block_b=None):
    B, N, E = x.shape
    H = num_heads
    assert E % H == 0
    scale = float(E) ** (-0.5)      # module uses emb_size**-0.5 (not per-head d**-0.5)

    (wqkv, wout, bout, g1, b1, g2, b2, wf1, bf1, wf2, bf2) = params

    # Fold the attention scale into the Q columns of to_qkv (one-time weight op),
    # then cast matmul weights to bf16 (MXU native dtype, halves weight DMA).
    wqkv_bf = wqkv.at[:, :E].multiply(scale).astype(jnp.bfloat16)
    wout_bf = wout.astype(jnp.bfloat16)
    wf1_bf = wf1.astype(jnp.bfloat16)
    wf2_bf = wf2.astype(jnp.bfloat16)

    # Auto block_b: aim for ~256 tokens per grid step (fills the MXU M dim and
    # amortizes per-step pipeline overhead) while keeping >= 2 grid steps when
    # possible so v7x's two TensorCores both get work under ("parallel",).
    if block_b is None:
        divisors = [dv for dv in range(1, B + 1) if B % dv == 0]
        fitting = [dv for dv in divisors if dv * N <= 256] or [1]
        block_b = max(fitting)
        two_step = [dv for dv in fitting if B // dv >= 2]
        if B // block_b < 2 and two_step:
            block_b = max(two_step)
    assert B % block_b == 0

    def const_spec(arr):
        nd = arr.ndim
        return pl.BlockSpec(arr.shape, lambda b, _nd=nd: (0,) * _nd)

    kernel = _make_kernel(H)

    return pl.pallas_call(
        kernel,
        out_shape=jax.ShapeDtypeStruct((B, N, E), jnp.float32),
        grid=(B // block_b,),
        in_specs=[
            pl.BlockSpec((block_b, N, E), lambda b: (b, 0, 0)),   # x
            const_spec(wqkv_bf), const_spec(wout_bf), const_spec(bout),
            const_spec(g1), const_spec(b1),
            const_spec(g2), const_spec(b2),
            const_spec(wf1_bf), const_spec(bf1),
            const_spec(wf2_bf), const_spec(bf2),
        ],
        out_specs=pl.BlockSpec((block_b, N, E), lambda b: (b, 0, 0)),
        scratch_shapes=[pltpu.VMEM((block_b * N, E), jnp.bfloat16)],
        compiler_params=pltpu.CompilerParams(
            dimension_semantics=("parallel",),
            vmem_limit_bytes=48 * 1024 * 1024),
    )(x, wqkv_bf, wout_bf, bout, g1, b1, g2, b2, wf1_bf, bf1, wf2_bf, bf2)


def _reference(x, params, num_heads):
    """Pure-JAX f32 reference mirroring the PyTorch forward (eval mode)."""
    (wqkv, wout, bout, g1, b1, g2, b2, wf1, bf1, wf2, bf2) = params
    B, N, E = x.shape
    d = E // num_heads
    scale = float(E) ** (-0.5)
    eps = 1e-5

    def ln(z, g, bb):
        mu = jnp.mean(z, -1, keepdims=True)
        var = jnp.mean((z - mu) ** 2, -1, keepdims=True)
        return (z - mu) / jnp.sqrt(var + eps) * g[0] + bb[0]

    xn1 = ln(x, g1, b1)
    qkv = xn1 @ wqkv
    q, k, v = jnp.split(qkv, 3, axis=-1)

    def heads(t):  # (B,N,E) -> (B,H,N,d)
        return t.reshape(B, N, num_heads, d).transpose(0, 2, 1, 3)

    q, k, v = heads(q), heads(k), heads(v)
    dots = jnp.einsum('bhid,bhjd->bhij', q, k) * scale
    attn = jax.nn.softmax(dots, axis=-1)
    out = jnp.einsum('bhij,bhjd->bhid', attn, v)
    out = out.transpose(0, 2, 1, 3).reshape(B, N, E)
    out = out @ wout + bout[0]
    x1 = x + out
    xn2 = ln(x1, g2, b2)
    ff = jax.nn.gelu(xn2 @ wf1 + bf1[0], approximate=False) @ wf2 + bf2[0]
    return x1 + ff


if __name__ == "__main__":
    # Small shapes consistent with the module: B=2, N=8 tokens, emb=32, heads=4, expansion=4
    B, N, E, H, EXP = 2, 8, 32, 4, 4
    key = jax.random.PRNGKey(0)
    ks = jax.random.split(key, 8)

    x = jax.random.normal(ks[0], (B, N, E), jnp.float32)

    # Deterministic parameter init (synthetic; shapes match the PyTorch __init__)
    wqkv = 0.05 * jax.random.normal(ks[1], (E, 3 * E), jnp.float32)   # to_qkv (no bias)
    wout = 0.05 * jax.random.normal(ks[2], (E, E), jnp.float32)       # out.weight^T
    bout = 0.01 * jax.random.normal(ks[3], (1, E), jnp.float32)       # out.bias
    g1 = jnp.ones((1, E), jnp.float32)                                # norm1.weight
    b1 = jnp.zeros((1, E), jnp.float32)                               # norm1.bias
    g2 = jnp.ones((1, E), jnp.float32)                                # norm2.weight
    b2 = jnp.zeros((1, E), jnp.float32)                               # norm2.bias
    wf1 = 0.05 * jax.random.normal(ks[4], (E, EXP * E), jnp.float32)  # ff[0].weight^T
    bf1 = 0.01 * jax.random.normal(ks[5], (1, EXP * E), jnp.float32)  # ff[0].bias
    wf2 = 0.05 * jax.random.normal(ks[6], (EXP * E, E), jnp.float32)  # ff[3].weight^T
    bf2 = 0.01 * jax.random.normal(ks[7], (1, E), jnp.float32)        # ff[3].bias

    params = (wqkv, wout, bout, g1, b1, g2, b2, wf1, bf1, wf2, bf2)

    out = transformer_encoder_block(x, params, num_heads=H)
    out = jax.block_until_ready(out)

    ref = _reference(x, params, num_heads=H)
    assert out.shape == (B, N, E)
    # Tolerance: matmuls run in bf16 (f32 acc) and the softmax denominator uses
    # the approx EUP reciprocal; LN / softmax / residual math is f32.
    assert jnp.allclose(out, ref, atol=3e-2, rtol=3e-2), "mismatch vs reference"

    print("KERNEL_OK")
</pallas_src>

<mosaic_0001>
module attributes {stable_mosaic.version = 11 : i64} {
  func.func @kernel(%arg0: i32, %arg1: memref<1x8x32xf32, #tpu.memory_space<vmem>>, %arg2: memref<32x96xbf16, #tpu.memory_space<vmem>>, %arg3: memref<32x32xbf16, #tpu.memory_space<vmem>>, %arg4: memref<1x32xf32, #tpu.memory_space<vmem>>, %arg5: memref<1x32xf32, #tpu.memory_space<vmem>>, %arg6: memref<1x32xf32, #tpu.memory_space<vmem>>, %arg7: memref<1x32xf32, #tpu.memory_space<vmem>>, %arg8: memref<1x32xf32, #tpu.memory_space<vmem>>, %arg9: memref<32x128xbf16, #tpu.memory_space<vmem>>, %arg10: memref<1x128xf32, #tpu.memory_space<vmem>>, %arg11: memref<128x32xbf16, #tpu.memory_space<vmem>>, %arg12: memref<1x32xf32, #tpu.memory_space<vmem>>, %arg13: memref<1x8x32xf32, #tpu.memory_space<vmem>>, %arg14: memref<8x32xbf16, #tpu.memory_space<vmem>>) attributes {dimension_semantics = [#tpu.dimension_semantics<parallel>], iteration_bounds = array<i64: 2>, scalar_prefetch = 0 : i64, scratch_operands = 1 : i64, tpu.core_type = #tpu.core_type<tc>, window_params = [{transform_indices = @transform_0, window_bounds = array<i64: 1, 8, 32>}, {pipeline_mode = #tpu.pipeline_mode<synchronous>, transform_indices = @transform_1, window_bounds = array<i64: 32, 96>}, {pipeline_mode = #tpu.pipeline_mode<synchronous>, transform_indices = @transform_2, window_bounds = array<i64: 32, 32>}, {pipeline_mode = #tpu.pipeline_mode<synchronous>, transform_indices = @transform_3, window_bounds = array<i64: 1, 32>}, {pipeline_mode = #tpu.pipeline_mode<synchronous>, transform_indices = @transform_4, window_bounds = array<i64: 1, 32>}, {pipeline_mode = #tpu.pipeline_mode<synchronous>, transform_indices = @transform_5, window_bounds = array<i64: 1, 32>}, {pipeline_mode = #tpu.pipeline_mode<synchronous>, transform_indices = @transform_6, window_bounds = array<i64: 1, 32>}, {pipeline_mode = #tpu.pipeline_mode<synchronous>, transform_indices = @transform_7, window_bounds = array<i64: 1, 32>}, {pipeline_mode = #tpu.pipeline_mode<synchronous>, transform_indices = @transform_8, window_bounds = array<i64: 32, 128>}, {pipeline_mode = #tpu.pipeline_mode<synchronous>, transform_indices = @transform_9, window_bounds = array<i64: 1, 128>}, {pipeline_mode = #tpu.pipeline_mode<synchronous>, transform_indices = @transform_10, window_bounds = array<i64: 128, 32>}, {pipeline_mode = #tpu.pipeline_mode<synchronous>, transform_indices = @transform_11, window_bounds = array<i64: 1, 32>}, {transform_indices = @transform_12, window_bounds = array<i64: 1, 8, 32>}]} {
    %c0 = arith.constant 0 : index
    %c0_0 = arith.constant 0 : index
    %c0_1 = arith.constant 0 : index
    %0 = vector.load %arg1[%c0, %c0_0, %c0_1] : memref<1x8x32xf32, #tpu.memory_space<vmem>>, vector<1x8x32xf32>
    %1 = vector.shape_cast %0 : vector<1x8x32xf32> to vector<8x32xf32>
    %cst = arith.constant dense<0.000000e+00> : vector<8xf32>
    %2 = vector.multi_reduction <add>, %1, %cst [1] : vector<8x32xf32> to vector<8xf32>
    %3 = vector.shape_cast %2 : vector<8xf32> to vector<8x1xf32>
    %cst_2 = arith.constant 3.200000e+01 : f32
    %4 = vector.broadcast %cst_2 : f32 to vector<8x1xf32>
    %5 = arith.divf %3, %4 : vector<8x1xf32>
    %6 = vector.broadcast %5 : vector<8x1xf32> to vector<8x32xf32>
    %7 = arith.subf %1, %6 : vector<8x32xf32>
    %8 = arith.mulf %7, %7 : vector<8x32xf32>
    %cst_3 = arith.constant dense<0.000000e+00> : vector<8xf32>
    %9 = vector.multi_reduction <add>, %8, %cst_3 [1] : vector<8x32xf32> to vector<8xf32>
    %10 = vector.shape_cast %9 : vector<8xf32> to vector<8x1xf32>
    %cst_4 = arith.constant 3.200000e+01 : f32
    %11 = vector.broadcast %cst_4 : f32 to vector<8x1xf32>
    %12 = arith.divf %10, %11 : vector<8x1xf32>
    %cst_5 = arith.constant 9.99999974E-6 : f32
    %13 = vector.broadcast %cst_5 : f32 to vector<8x1xf32>
    %14 = arith.addf %12, %13 : vector<8x1xf32>
    %15 = math.rsqrt %14 : vector<8x1xf32>
    %16 = vector.broadcast %15 : vector<8x1xf32> to vector<8x32xf32>
    %17 = arith.mulf %7, %16 : vector<8x32xf32>
    %c0_6 = arith.constant 0 : index
    %c0_7 = arith.constant 0 : index
    %18 = vector.load %arg5[%c0_6, %c0_7] : memref<1x32xf32, #tpu.memory_space<vmem>>, vector<1x32xf32>
    %19 = vector.broadcast %18 : vector<1x32xf32> to vector<8x32xf32>
    %20 = arith.mulf %17, %19 : vector<8x32xf32>
    %c0_8 = arith.constant 0 : index
    %c0_9 = arith.constant 0 : index
    %21 = vector.load %arg6[%c0_8, %c0_9] : memref<1x32xf32, #tpu.memory_space<vmem>>, vector<1x32xf32>
    %22 = vector.broadcast %21 : vector<1x32xf32> to vector<8x32xf32>
    %23 = arith.addf %20, %22 : vector<8x32xf32>
    %24 = arith.truncf %23 : vector<8x32xf32> to vector<8x32xbf16>
    %c0_10 = arith.constant 0 : index
    %c0_11 = arith.constant 0 : index
    %25 = vector.load %arg2[%c0_10, %c0_11] : memref<32x96xbf16, #tpu.memory_space<vmem>>, vector<32x96xbf16>
    %cst_12 = arith.constant dense<0.000000e+00> : vector<8x96xf32>
    %26 = tpu.matmul %24, %25, %cst_12 {dimension_numbers = #tpu.dot_dimension_numbers<[1], [0], [0], [1], [0, 0, 1, 1], [], []>} : vector<8x32xbf16>, vector<32x96xbf16>, vector<8x96xf32> -> vector<8x96xf32>
    %27 = vector.extract_strided_slice %26 {offsets = [0, 0], sizes = [8, 8], strides = [1, 1]} : vector<8x96xf32> to vector<8x8xf32>
    %28 = arith.truncf %27 : vector<8x8xf32> to vector<8x8xbf16>
    %29 = vector.shape_cast %28 : vector<8x8xbf16> to vector<1x8x8xbf16>
    %30 = vector.extract_strided_slice %26 {offsets = [0, 32], sizes = [8, 8], strides = [1, 1]} : vector<8x96xf32> to vector<8x8xf32>
    %31 = arith.truncf %30 : vector<8x8xf32> to vector<8x8xbf16>
    %32 = vector.shape_cast %31 : vector<8x8xbf16> to vector<1x8x8xbf16>
    %33 = vector.extract_strided_slice %26 {offsets = [0, 64], sizes = [8, 8], strides = [1, 1]} : vector<8x96xf32> to vector<8x8xf32>
    %34 = arith.truncf %33 : vector<8x8xf32> to vector<8x8xbf16>
    %35 = vector.shape_cast %34 : vector<8x8xbf16> to vector<1x8x8xbf16>
    "tpu.trace_start"() <{level = 10 : i32, message = "bid,bjd->bij"}> : () -> ()
    %cst_13 = arith.constant dense<0.000000e+00> : vector<1x8x8xf32>
    %36 = tpu.matmul %29, %32, %cst_13 {dimension_numbers = #tpu.dot_dimension_numbers<[2], [2], [1], [1], [0, 0, 0, 1, 1, 1], [0], [0]>} : vector<1x8x8xbf16>, vector<1x8x8xbf16>, vector<1x8x8xf32> -> vector<1x8x8xf32>
    "tpu.trace_stop"() : () -> ()
    %cst_14 = arith.constant dense<0xFF800000> : vector<1x8xf32>
    %37 = vector.multi_reduction <maximumf>, %36, %cst_14 [2] : vector<1x8x8xf32> to vector<1x8xf32>
    %38 = vector.shape_cast %37 : vector<1x8xf32> to vector<1x8x1xf32>
    %39 = vector.broadcast %38 : vector<1x8x1xf32> to vector<1x8x8xf32>
    %40 = arith.subf %36, %39 : vector<1x8x8xf32>
    %41 = math.exp %40 : vector<1x8x8xf32>
    %cst_15 = arith.constant dense<0.000000e+00> : vector<1x8xf32>
    %42 = vector.multi_reduction <add>, %41, %cst_15 [2] : vector<1x8x8xf32> to vector<1x8xf32>
    %43 = vector.shape_cast %42 : vector<1x8xf32> to vector<1x8x1xf32>
    %44 = tpu.reciprocal %43 {approx = true} : vector<1x8x1xf32> -> vector<1x8x1xf32>
    %45 = vector.broadcast %44 : vector<1x8x1xf32> to vector<1x8x8xf32>
    %46 = arith.mulf %41, %45 : vector<1x8x8xf32>
    %47 = arith.truncf %46 : vector<1x8x8xf32> to vector<1x8x8xbf16>
    "tpu.trace_start"() <{level = 10 : i32, message = "bij,bjd->bid"}> : () -> ()
    %cst_16 = arith.constant dense<0.000000e+00> : vector<1x8x8xf32>
    %48 = tpu.matmul %47, %35, %cst_16 {dimension_numbers = #tpu.dot_dimension_numbers<[2], [1], [1], [2], [0, 0, 0, 1, 1, 2], [0], [0]>} : vector<1x8x8xbf16>, vector<1x8x8xbf16>, vector<1x8x8xf32> -> vector<1x8x8xf32>
    "tpu.trace_stop"() : () -> ()
    %49 = vector.shape_cast %48 : vector<1x8x8xf32> to vector<8x8xf32>
    %50 = arith.truncf %49 : vector<8x8xf32> to vector<8x8xbf16>
    %c0_17 = arith.constant 0 : index
    %c0_18 = arith.constant 0 : index
    %51 = vector.load %arg14[%c0_17, %c0_18] : memref<8x32xbf16, #tpu.memory_space<vmem>>, vector<8x8xbf16>
    tpu.vector_store %arg14[%c0_17, %c0_18], %50 {strides = array<i32>} : memref<8x32xbf16, #tpu.memory_space<vmem>>, vector<8x8xbf16>,
    %52 = vector.extract_strided_slice %26 {offsets = [0, 8], sizes = [8, 8], strides = [1, 1]} : vector<8x96xf32> to vector<8x8xf32>
    %53 = arith.truncf %52 : vector<8x8xf32> to vector<8x8xbf16>
    %54 = vector.shape_cast %53 : vector<8x8xbf16> to vector<1x8x8xbf16>
    %55 = vector.extract_strided_slice %26 {offsets = [0, 40], sizes = [8, 8], strides = [1, 1]} : vector<8x96xf32> to vector<8x8xf32>
    %56 = arith.truncf %55 : vector<8x8xf32> to vector<8x8xbf16>
    %57 = vector.shape_cast %56 : vector<8x8xbf16> to vector<1x8x8xbf16>
    %58 = vector.extract_strided_slice %26 {offsets = [0, 72], sizes = [8, 8], strides = [1, 1]} : vector<8x96xf32> to vector<8x8xf32>
    %59 = arith.truncf %58 : vector<8x8xf32> to vector<8x8xbf16>
    %60 = vector.shape_cast %59 : vector<8x8xbf16> to vector<1x8x8xbf16>
    "tpu.trace_start"() <{level = 10 : i32, message = "bid,bjd->bij"}> : () -> ()
    %cst_19 = arith.constant dense<0.000000e+00> : vector<1x8x8xf32>
    %61 = tpu.matmul %54, %57, %cst_19 {dimension_numbers = #tpu.dot_dimension_numbers<[2], [2], [1], [1], [0, 0, 0, 1, 1, 1], [0], [0]>} : vector<1x8x8xbf16>, vector<1x8x8xbf16>, vector<1x8x8xf32> -> vector<1x8x8xf32>
    "tpu.trace_stop"() : () -> ()
    %cst_20 = arith.constant dense<0xFF800000> : vector<1x8xf32>
    %62 = vector.multi_reduction <maximumf>, %61, %cst_20 [2] : vector<1x8x8xf32> to vector<1x8xf32>
    %63 = vector.shape_cast %62 : vector<1x8xf32> to vector<1x8x1xf32>
    %64 = vector.broadcast %63 : vector<1x8x1xf32> to vector<1x8x8xf32>
    %65 = arith.subf %61, %64 : vector<1x8x8xf32>
    %66 = math.exp %65 : vector<1x8x8xf32>
    %cst_21 = arith.constant dense<0.000000e+00> : vector<1x8xf32>
    %67 = vector.multi_reduction <add>, %66, %cst_21 [2] : vector<1x8x8xf32> to vector<1x8xf32>
    %68 = vector.shape_cast %67 : vector<1x8xf32> to vector<1x8x1xf32>
    %69 = tpu.reciprocal %68 {approx = true} : vector<1x8x1xf32> -> vector<1x8x1xf32>
    %70 = vector.broadcast %69 : vector<1x8x1xf32> to vector<1x8x8xf32>
    %71 = arith.mulf %66, %70 : vector<1x8x8xf32>
    %72 = arith.truncf %71 : vector<1x8x8xf32> to vector<1x8x8xbf16>
    "tpu.trace_start"() <{level = 10 : i32, message = "bij,bjd->bid"}> : () -> ()
    %cst_22 = arith.constant dense<0.000000e+00> : vector<1x8x8xf32>
    %73 = tpu.matmul %72, %60, %cst_22 {dimension_numbers = #tpu.dot_dimension_numbers<[2], [1], [1], [2], [0, 0, 0, 1, 1, 2], [0], [0]>} : vector<1x8x8xbf16>, vector<1x8x8xbf16>, vector<1x8x8xf32> -> vector<1x8x8xf32>
    "tpu.trace_stop"() : () -> ()
    %74 = vector.shape_cast %73 : vector<1x8x8xf32> to vector<8x8xf32>
    %75 = arith.truncf %74 : vector<8x8xf32> to vector<8x8xbf16>
    %c0_23 = arith.constant 0 : index
    %c8 = arith.constant 8 : index
    %76 = vector.load %arg14[%c0_23, %c8] : memref<8x32xbf16, #tpu.memory_space<vmem>>, vector<8x8xbf16>
    tpu.vector_store %arg14[%c0_23, %c8], %75 {strides = array<i32>} : memref<8x32xbf16, #tpu.memory_space<vmem>>, vector<8x8xbf16>,
    %77 = vector.extract_strided_slice %26 {offsets = [0, 16], sizes = [8, 8], strides = [1, 1]} : vector<8x96xf32> to vector<8x8xf32>
    %78 = arith.truncf %77 : vector<8x8xf32> to vector<8x8xbf16>
    %79 = vector.shape_cast %78 : vector<8x8xbf16> to vector<1x8x8xbf16>
    %80 = vector.extract_strided_slice %26 {offsets = [0, 48], sizes = [8, 8], strides = [1, 1]} : vector<8x96xf32> to vector<8x8xf32>
    %81 = arith.truncf %80 : vector<8x8xf32> to vector<8x8xbf16>
    %82 = vector.shape_cast %81 : vector<8x8xbf16> to vector<1x8x8xbf16>
    %83 = vector.extract_strided_slice %26 {offsets = [0, 80], sizes = [8, 8], strides = [1, 1]} : vector<8x96xf32> to vector<8x8xf32>
    %84 = arith.truncf %83 : vector<8x8xf32> to vector<8x8xbf16>
    %85 = vector.shape_cast %84 : vector<8x8xbf16> to vector<1x8x8xbf16>
    "tpu.trace_start"() <{level = 10 : i32, message = "bid,bjd->bij"}> : () -> ()
    %cst_24 = arith.constant dense<0.000000e+00> : vector<1x8x8xf32>
    %86 = tpu.matmul %79, %82, %cst_24 {dimension_numbers = #tpu.dot_dimension_numbers<[2], [2], [1], [1], [0, 0, 0, 1, 1, 1], [0], [0]>} : vector<1x8x8xbf16>, vector<1x8x8xbf16>, vector<1x8x8xf32> -> vector<1x8x8xf32>
    "tpu.trace_stop"() : () -> ()
    %cst_25 = arith.constant dense<0xFF800000> : vector<1x8xf32>
    %87 = vector.multi_reduction <maximumf>, %86, %cst_25 [2] : vector<1x8x8xf32> to vector<1x8xf32>
    %88 = vector.shape_cast %87 : vector<1x8xf32> to vector<1x8x1xf32>
    %89 = vector.broadcast %88 : vector<1x8x1xf32> to vector<1x8x8xf32>
    %90 = arith.subf %86, %89 : vector<1x8x8xf32>
    %91 = math.exp %90 : vector<1x8x8xf32>
    %cst_26 = arith.constant dense<0.000000e+00> : vector<1x8xf32>
    %92 = vector.multi_reduction <add>, %91, %cst_26 [2] : vector<1x8x8xf32> to vector<1x8xf32>
    %93 = vector.shape_cast %92 : vector<1x8xf32> to vector<1x8x1xf32>
    %94 = tpu.reciprocal %93 {approx = true} : vector<1x8x1xf32> -> vector<1x8x1xf32>
    %95 = vector.broadcast %94 : vector<1x8x1xf32> to vector<1x8x8xf32>
    %96 = arith.mulf %91, %95 : vector<1x8x8xf32>
    %97 = arith.truncf %96 : vector<1x8x8xf32> to vector<1x8x8xbf16>
    "tpu.trace_start"() <{level = 10 : i32, message = "bij,bjd->bid"}> : () -> ()
    %cst_27 = arith.constant dense<0.000000e+00> : vector<1x8x8xf32>
    %98 = tpu.matmul %97, %85, %cst_27 {dimension_numbers = #tpu.dot_dimension_numbers<[2], [1], [1], [2], [0, 0, 0, 1, 1, 2], [0], [0]>} : vector<1x8x8xbf16>, vector<1x8x8xbf16>, vector<1x8x8xf32> -> vector<1x8x8xf32>
    "tpu.trace_stop"() : () -> ()
    %99 = vector.shape_cast %98 : vector<1x8x8xf32> to vector<8x8xf32>
    %100 = arith.truncf %99 : vector<8x8xf32> to vector<8x8xbf16>
    %c0_28 = arith.constant 0 : index
    %c16 = arith.constant 16 : index
    %101 = vector.load %arg14[%c0_28, %c16] : memref<8x32xbf16, #tpu.memory_space<vmem>>, vector<8x8xbf16>
    tpu.vector_store %arg14[%c0_28, %c16], %100 {strides = array<i32>} : memref<8x32xbf16, #tpu.memory_space<vmem>>, vector<8x8xbf16>,
    %102 = vector.extract_strided_slice %26 {offsets = [0, 24], sizes = [8, 8], strides = [1, 1]} : vector<8x96xf32> to vector<8x8xf32>
    %103 = arith.truncf %102 : vector<8x8xf32> to vector<8x8xbf16>
    %104 = vector.shape_cast %103 : vector<8x8xbf16> to vector<1x8x8xbf16>
    %105 = vector.extract_strided_slice %26 {offsets = [0, 56], sizes = [8, 8], strides = [1, 1]} : vector<8x96xf32> to vector<8x8xf32>
    %106 = arith.truncf %105 : vector<8x8xf32> to vector<8x8xbf16>
    %107 = vector.shape_cast %106 : vector<8x8xbf16> to vector<1x8x8xbf16>
    %108 = vector.extract_strided_slice %26 {offsets = [0, 88], sizes = [8, 8], strides = [1, 1]} : vector<8x96xf32> to vector<8x8xf32>
    %109 = arith.truncf %108 : vector<8x8xf32> to vector<8x8xbf16>
    %110 = vector.shape_cast %109 : vector<8x8xbf16> to vector<1x8x8xbf16>
    "tpu.trace_start"() <{level = 10 : i32, message = "bid,bjd->bij"}> : () -> ()
    %cst_29 = arith.constant dense<0.000000e+00> : vector<1x8x8xf32>
    %111 = tpu.matmul %104, %107, %cst_29 {dimension_numbers = #tpu.dot_dimension_numbers<[2], [2], [1], [1], [0, 0, 0, 1, 1, 1], [0], [0]>} : vector<1x8x8xbf16>, vector<1x8x8xbf16>, vector<1x8x8xf32> -> vector<1x8x8xf32>
    "tpu.trace_stop"() : () -> ()
    %cst_30 = arith.constant dense<0xFF800000> : vector<1x8xf32>
    %112 = vector.multi_reduction <maximumf>, %111, %cst_30 [2] : vector<1x8x8xf32> to vector<1x8xf32>
    %113 = vector.shape_cast %112 : vector<1x8xf32> to vector<1x8x1xf32>
    %114 = vector.broadcast %113 : vector<1x8x1xf32> to vector<1x8x8xf32>
    %115 = arith.subf %111, %114 : vector<1x8x8xf32>
    %116 = math.exp %115 : vector<1x8x8xf32>
    %cst_31 = arith.constant dense<0.000000e+00> : vector<1x8xf32>
    %117 = vector.multi_reduction <add>, %116, %cst_31 [2] : vector<1x8x8xf32> to vector<1x8xf32>
    %118 = vector.shape_cast %117 : vector<1x8xf32> to vector<1x8x1xf32>
    %119 = tpu.reciprocal %118 {approx = true} : vector<1x8x1xf32> -> vector<1x8x1xf32>
    %120 = vector.broadcast %119 : vector<1x8x1xf32> to vector<1x8x8xf32>
    %121 = arith.mulf %116, %120 : vector<1x8x8xf32>
    %122 = arith.truncf %121 : vector<1x8x8xf32> to vector<1x8x8xbf16>
    "tpu.trace_start"() <{level = 10 : i32, message = "bij,bjd->bid"}> : () -> ()
    %cst_32 = arith.constant dense<0.000000e+00> : vector<1x8x8xf32>
    %123 = tpu.matmul %122, %110, %cst_32 {dimension_numbers = #tpu.dot_dimension_numbers<[2], [1], [1], [2], [0, 0, 0, 1, 1, 2], [0], [0]>} : vector<1x8x8xbf16>, vector<1x8x8xbf16>, vector<1x8x8xf32> -> vector<1x8x8xf32>
    "tpu.trace_stop"() : () -> ()
    %124 = vector.shape_cast %123 : vector<1x8x8xf32> to vector<8x8xf32>
    %125 = arith.truncf %124 : vector<8x8xf32> to vector<8x8xbf16>
    %c0_33 = arith.constant 0 : index
    %c24 = arith.constant 24 : index
    %126 = vector.load %arg14[%c0_33, %c24] : memref<8x32xbf16, #tpu.memory_space<vmem>>, vector<8x8xbf16>
    tpu.vector_store %arg14[%c0_33, %c24], %125 {strides = array<i32>} : memref<8x32xbf16, #tpu.memory_space<vmem>>, vector<8x8xbf16>,
    %c0_34 = arith.constant 0 : index
    %c0_35 = arith.constant 0 : index
    %127 = vector.load %arg14[%c0_34, %c0_35] : memref<8x32xbf16, #tpu.memory_space<vmem>>, vector<8x32xbf16>
    %c0_36 = arith.constant 0 : index
    %c0_37 = arith.constant 0 : index
    %128 = vector.load %arg3[%c0_36, %c0_37] : memref<32x32xbf16, #tpu.memory_space<vmem>>, vector<32x32xbf16>
    %cst_38 = arith.constant dense<0.000000e+00> : vector<8x32xf32>
    %129 = tpu.matmul %127, %128, %cst_38 {dimension_numbers = #tpu.dot_dimension_numbers<[1], [0], [0], [1], [0, 0, 1, 1], [], []>} : vector<8x32xbf16>, vector<32x32xbf16>, vector<8x32xf32> -> vector<8x32xf32>
    %c0_39 = arith.constant 0 : index
    %c0_40 = arith.constant 0 : index
    %130 = vector.load %arg4[%c0_39, %c0_40] : memref<1x32xf32, #tpu.memory_space<vmem>>, vector<1x32xf32>
    %131 = vector.broadcast %130 : vector<1x32xf32> to vector<8x32xf32>
    %132 = arith.addf %129, %131 : vector<8x32xf32>
    %133 = arith.addf %1, %132 : vector<8x32xf32>
    %cst_41 = arith.constant dense<0.000000e+00> : vector<8xf32>
    %134 = vector.multi_reduction <add>, %133, %cst_41 [1] : vector<8x32xf32> to vector<8xf32>
    %135 = vector.shape_cast %134 : vector<8xf32> to vector<8x1xf32>
    %cst_42 = arith.constant 3.200000e+01 : f32
    %136 = vector.broadcast %cst_42 : f32 to vector<8x1xf32>
    %137 = arith.divf %135, %136 : vector<8x1xf32>
    %138 = vector.broadcast %137 : vector<8x1xf32> to vector<8x32xf32>
    %139 = arith.subf %133, %138 : vector<8x32xf32>
    %140 = arith.mulf %139, %139 : vector<8x32xf32>
    %cst_43 = arith.constant dense<0.000000e+00> : vector<8xf32>
    %141 = vector.multi_reduction <add>, %140, %cst_43 [1] : vector<8x32xf32> to vector<8xf32>
    %142 = vector.shape_cast %141 : vector<8xf32> to vector<8x1xf32>
    %cst_44 = arith.constant 3.200000e+01 : f32
    %143 = vector.broadcast %cst_44 : f32 to vector<8x1xf32>
    %144 = arith.divf %142, %143 : vector<8x1xf32>
    %cst_45 = arith.constant 9.99999974E-6 : f32
    %145 = vector.broadcast %cst_45 : f32 to vector<8x1xf32>
    %146 = arith.addf %144, %145 : vector<8x1xf32>
    %147 = math.rsqrt %146 : vector<8x1xf32>
    %148 = vector.broadcast %147 : vector<8x1xf32> to vector<8x32xf32>
    %149 = arith.mulf %139, %148 : vector<8x32xf32>
    %c0_46 = arith.constant 0 : index
    %c0_47 = arith.constant 0 : index
    %150 = vector.load %arg7[%c0_46, %c0_47] : memref<1x32xf32, #tpu.memory_space<vmem>>, vector<1x32xf32>
    %151 = vector.broadcast %150 : vector<1x32xf32> to vector<8x32xf32>
    %152 = arith.mulf %149, %151 : vector<8x32xf32>
    %c0_48 = arith.constant 0 : index
    %c0_49 = arith.constant 0 : index
    %153 = vector.load %arg8[%c0_48, %c0_49] : memref<1x32xf32, #tpu.memory_space<vmem>>, vector<1x32xf32>
    %154 = vector.broadcast %153 : vector<1x32xf32> to vector<8x32xf32>
    %155 = arith.addf %152, %154 : vector<8x32xf32>
    %156 = arith.truncf %155 : vector<8x32xf32> to vector<8x32xbf16>
    %c0_50 = arith.constant 0 : index
    %c0_51 = arith.constant 0 : index
    %157 = vector.load %arg9[%c0_50, %c0_51] : memref<32x128xbf16, #tpu.memory_space<vmem>>, vector<32x128xbf16>
    %cst_52 = arith.constant dense<0.000000e+00> : vector<8x128xf32>
    %158 = tpu.matmul %156, %157, %cst_52 {dimension_numbers = #tpu.dot_dimension_numbers<[1], [0], [0], [1], [0, 0, 1, 1], [], []>} : vector<8x32xbf16>, vector<32x128xbf16>, vector<8x128xf32> -> vector<8x128xf32>
    %c0_53 = arith.constant 0 : index
    %c0_54 = arith.constant 0 : index
    %159 = vector.load %arg10[%c0_53, %c0_54] : memref<1x128xf32, #tpu.memory_space<vmem>>, vector<1x128xf32>
    %160 = vector.broadcast %159 : vector<1x128xf32> to vector<8x128xf32>
    %161 = arith.addf %158, %160 : vector<8x128xf32>
    %cst_55 = arith.constant 5.000000e-01 : f32
    %162 = vector.broadcast %cst_55 : f32 to vector<8x128xf32>
    %163 = arith.mulf %162, %161 : vector<8x128xf32>
    %cst_56 = arith.constant 0.707106769 : f32
    %164 = vector.broadcast %cst_56 : f32 to vector<8x128xf32>
    %165 = arith.mulf %161, %164 : vector<8x128xf32>
    %166 = math.absf %165 : vector<8x128xf32>
    %cst_57 = arith.constant 0.327591091 : f32
    %167 = vector.broadcast %cst_57 : f32 to vector<8x128xf32>
    %168 = arith.mulf %167, %166 : vector<8x128xf32>
    %cst_58 = arith.constant 1.000000e+00 : f32
    %169 = vector.broadcast %cst_58 : f32 to vector<8x128xf32>
    %170 = arith.addf %169, %168 : vector<8x128xf32>
    %cst_59 = arith.constant 1.000000e+00 : f32
    %171 = vector.broadcast %cst_59 : f32 to vector<8x128xf32>
    %172 = arith.divf %171, %170 : vector<8x128xf32>
    %cst_60 = arith.constant 1.06140542 : f32
    %173 = vector.broadcast %cst_60 : f32 to vector<8x128xf32>
    %174 = arith.mulf %173, %172 : vector<8x128xf32>
    %cst_61 = arith.constant -1.45315206 : f32
    %175 = vector.broadcast %cst_61 : f32 to vector<8x128xf32>
    %176 = arith.addf %174, %175 : vector<8x128xf32>
    %177 = arith.mulf %176, %172 : vector<8x128xf32>
    %cst_62 = arith.constant 1.42141378 : f32
    %178 = vector.broadcast %cst_62 : f32 to vector<8x128xf32>
    %179 = arith.addf %177, %178 : vector<8x128xf32>
    %180 = arith.mulf %179, %172 : vector<8x128xf32>
    %cst_63 = arith.constant -0.284496725 : f32
    %181 = vector.broadcast %cst_63 : f32 to vector<8x128xf32>
    %182 = arith.addf %180, %181 : vector<8x128xf32>
    %183 = arith.mulf %182, %172 : vector<8x128xf32>
    %cst_64 = arith.constant 0.254829586 : f32
    %184 = vector.broadcast %cst_64 : f32 to vector<8x128xf32>
    %185 = arith.addf %183, %184 : vector<8x128xf32>
    %186 = arith.mulf %185, %172 : vector<8x128xf32>
    %cst_65 = arith.constant 0.000000e+00 : f32
    %187 = vector.broadcast %cst_65 : f32 to vector<8x128xf32>
    %188 = arith.subf %187, %166 : vector<8x128xf32>
    %189 = arith.mulf %188, %166 : vector<8x128xf32>
    %190 = math.exp %189 : vector<8x128xf32>
    %191 = arith.mulf %186, %190 : vector<8x128xf32>
    %cst_66 = arith.constant 1.000000e+00 : f32
    %192 = vector.broadcast %cst_66 : f32 to vector<8x128xf32>
    %193 = arith.subf %192, %191 : vector<8x128xf32>
    %cst_67 = arith.constant 0.000000e+00 : f32
    %194 = vector.broadcast %cst_67 : f32 to vector<8x128xf32>
    %195 = arith.cmpf oge, %165, %194 : vector<8x128xf32>
    %cst_68 = arith.constant 0.000000e+00 : f32
    %196 = vector.broadcast %cst_68 : f32 to vector<8x128xf32>
    %197 = arith.subf %196, %193 : vector<8x128xf32>
    %198 = arith.select %195, %193, %197 : vector<8x128xi1>, vector<8x128xf32>
    %cst_69 = arith.constant 1.000000e+00 : f32
    %199 = vector.broadcast %cst_69 : f32 to vector<8x128xf32>
    %200 = arith.addf %199, %198 : vector<8x128xf32>
    %201 = arith.mulf %163, %200 : vector<8x128xf32>
    %202 = arith.truncf %201 : vector<8x128xf32> to vector<8x128xbf16>
    %c0_70 = arith.constant 0 : index
    %c0_71 = arith.constant 0 : index
    %203 = vector.load %arg11[%c0_70, %c0_71] : memref<128x32xbf16, #tpu.memory_space<vmem>>, vector<128x32xbf16>
    %cst_72 = arith.constant dense<0.000000e+00> : vector<8x32xf32>
    %204 = tpu.matmul %202, %203, %cst_72 {dimension_numbers = #tpu.dot_dimension_numbers<[1], [0], [0], [1], [0, 0, 1, 1], [], []>} : vector<8x128xbf16>, vector<128x32xbf16>, vector<8x32xf32> -> vector<8x32xf32>
    %c0_73 = arith.constant 0 : index
    %c0_74 = arith.constant 0 : index
    %205 = vector.load %arg12[%c0_73, %c0_74] : memref<1x32xf32, #tpu.memory_space<vmem>>, vector<1x32xf32>
    %206 = vector.broadcast %205 : vector<1x32xf32> to vector<8x32xf32>
    %207 = arith.addf %204, %206 : vector<8x32xf32>
    %208 = arith.addf %133, %207 : vector<8x32xf32>
    %209 = vector.shape_cast %208 : vector<8x32xf32> to vector<1x8x32xf32>
    %c0_75 = arith.constant 0 : index
    %c0_76 = arith.constant 0 : index
    %c0_77 = arith.constant 0 : index
    %210 = vector.load %arg13[%c0_75, %c0_76, %c0_77] : memref<1x8x32xf32, #tpu.memory_space<vmem>>, vector<1x8x32xf32>
    tpu.vector_store %arg13[%c0_75, %c0_76, %c0_77], %209 {strides = array<i32>} : memref<1x8x32xf32, #tpu.memory_space<vmem>>, vector<1x8x32xf32>,
    return
  }
  func.func @transform_0(%arg0: i32) -> (i32, i32, i32) {
    %c0_i32 = arith.constant 0 : i32
    %c0_i32_0 = arith.constant 0 : i32
    %c0_i32_1 = arith.constant 0 : i32
    return %arg0, %c0_i32, %c0_i32_0 : i32, i32, i32
  }
  func.func @transform_1(%arg0: i32) -> (i32, i32) {
    %c0_i32 = arith.constant 0 : i32
    %c0_i32_0 = arith.constant 0 : i32
    %c0_i32_1 = arith.constant 0 : i32
    return %c0_i32, %c0_i32_0 : i32, i32
  }
  func.func @transform_2(%arg0: i32) -> (i32, i32) {
    %c0_i32 = arith.constant 0 : i32
    %c0_i32_0 = arith.constant 0 : i32
    %c0_i32_1 = arith.constant 0 : i32
    return %c0_i32, %c0_i32_0 : i32, i32
  }
  func.func @transform_3(%arg0: i32) -> (i32, i32) {
    %c0_i32 = arith.constant 0 : i32
    %c0_i32_0 = arith.constant 0 : i32
    %c0_i32_1 = arith.constant 0 : i32
    return %c0_i32, %c0_i32_0 : i32, i32
  }
  func.func @transform_4(%arg0: i32) -> (i32, i32) {
    %c0_i32 = arith.constant 0 : i32
    %c0_i32_0 = arith.constant 0 : i32
    %c0_i32_1 = arith.constant 0 : i32
    return %c0_i32, %c0_i32_0 : i32, i32
  }
  func.func @transform_5(%arg0: i32) -> (i32, i32) {
    %c0_i32 = arith.constant 0 : i32
    %c0_i32_0 = arith.constant 0 : i32
    %c0_i32_1 = arith.constant 0 : i32
    return %c0_i32, %c0_i32_0 : i32, i32
  }
  func.func @transform_6(%arg0: i32) -> (i32, i32) {
    %c0_i32 = arith.constant 0 : i32
    %c0_i32_0 = arith.constant 0 : i32
    %c0_i32_1 = arith.constant 0 : i32
    return %c0_i32, %c0_i32_0 : i32, i32
  }
  func.func @transform_7(%arg0: i32) -> (i32, i32) {
    %c0_i32 = arith.constant 0 : i32
    %c0_i32_0 = arith.constant 0 : i32
    %c0_i32_1 = arith.constant 0 : i32
    return %c0_i32, %c0_i32_0 : i32, i32
  }
  func.func @transform_8(%arg0: i32) -> (i32, i32) {
    %c0_i32 = arith.constant 0 : i32
    %c0_i32_0 = arith.constant 0 : i32
    %c0_i32_1 = arith.constant 0 : i32
    return %c0_i32, %c0_i32_0 : i32, i32
  }
  func.func @transform_9(%arg0: i32) -> (i32, i32) {
    %c0_i32 = arith.constant 0 : i32
    %c0_i32_0 = arith.constant 0 : i32
    %c0_i32_1 = arith.constant 0 : i32
    return %c0_i32, %c0_i32_0 : i32, i32
  }
  func.func @transform_10(%arg0: i32) -> (i32, i32) {
    %c0_i32 = arith.constant 0 : i32
    %c0_i32_0 = arith.constant 0 : i32
    %c0_i32_1 = arith.constant 0 : i32
    return %c0_i32, %c0_i32_0 : i32, i32
  }
  func.func @transform_11(%arg0: i32) -> (i32, i32) {
    %c0_i32 = arith.constant 0 : i32
    %c0_i32_0 = arith.constant 0 : i32
    %c0_i32_1 = arith.constant 0 : i32
    return %c0_i32, %c0_i32_0 : i32, i32
  }
  func.func @transform_12(%arg0: i32) -> (i32, i32, i32) {
    %c0_i32 = arith.constant 0 : i32
    %c0_i32_0 = arith.constant 0 : i32
    %c0_i32_1 = arith.constant 0 : i32
    return %arg0, %c0_i32, %c0_i32_0 : i32, i32, i32
  }
}

</mosaic_0001>

<bundles_post_ra>
// kernel: tpu_custom_call.1
= control target key start
LH: loop header
LB: loop body
LE: loop exit
PB: predicated region body
PF: predicated region fallthrough
CT: control target
= control target key end

     0   :  { %s2030_s0 = inlined_call_operand.vmem [shape: f32[2,8,32], index: 0, kind: input, shape index: {}]   ;;  %s2031_s1 = inlined_call_operand.vmem [shape: bf16[32,96], index: 1, kind: input, shape index: {}]   ;;  %s2032_s2 = inlined_call_operand.vmem [shape: bf16[32,32], index: 2, kind: input, shape index: {}]   ;;  %s2033_s3 = inlined_call_operand.vmem [shape: f32[1,32], index: 3, kind: input, shape index: {}]   ;;  %s2034_s4 = inlined_call_operand.vmem [shape: f32[1,32], index: 4, kind: input, shape index: {}]   ;;  %s2035_s5 = inlined_call_operand.vmem [shape: f32[1,32], index: 5, kind: input, shape index: {}]   ;;  %s2036_s6 = inlined_call_operand.vmem [shape: f32[1,32], index: 6, kind: input, shape index: {}]   ;;  %s2037_s7 = inlined_call_operand.vmem [shape: f32[1,32], index: 7, kind: input, shape index: {}]   ;;  %s2038_s8 = inlined_call_operand.vmem [shape: bf16[32,128], index: 8, kind: input, shape index: {}]   ;;  %s2039_s9 = inlined_call_operand.vmem [shape: f32[1,128], index: 9, kind: input, shape index: {}]   ;;  %s2040_s10 = inlined_call_operand.vmem [shape: bf16[128,32], index: 10, kind: input, shape index: {}]   ;;  %s2041_s11 = inlined_call_operand.vmem [shape: f32[1,32], index: 11, kind: input, shape index: {}]   ;;  %s2042_s12 = inlined_call_operand.hbm [shape: f32[2,8,32], index: 12, kind: output, shape index: {}]  }
   0x1   :  { %2043 = sst [smem:[#allocation6_spill]] %s2030_s0 }
   0x2   :  { %2044 = sst [smem:[#allocation7_spill]] %s2031_s1 }
   0x3   :  { %17 = vsyncpa [#allocation4], 0 }
   0x4   :  { %19 = vsyncpa [#allocation4 + $0x1], 0  ;;  %s1765_s21 = smov 0   ;;  %s1767_s22 = smov 0  }
   0x5   :  { %s1769_s23 = smov 0   ;;  %s1771_s24 = smov 0  }
   0x6 LB: > { %s1786_s25 = sadd.s32 4294967295, %s1681_s24   ;;  %s1352_s26 = sadd.s32 4294967294, %s1681_s24   ;;  %s1681_s24 = sphi %s1771_s24, %s2052_s24   ;;  %s1677_s23 = sphi %s1769_s23, %s2051_s23   ;;  %s1673_s22 = sphi %s1767_s22, %s2050_s22   ;;  %s1669_s21 = sphi %s1765_s21, %s2049_s21  }
   0x7   : > { %s1790_s27 = sadd.s32 1, %s1681_s24   ;;  %s289_s28 = sadd.s32 1, %s1677_s23 }
   0x8   : > { %s286_s29 = ssub.s32 %s1681_s24, %s1790_s27  ;;  %p299_p0 = scmp.ne.s32.totalorder %s1677_s23, %s1673_s22 }
   0x9   : > { %p287_p1 = scmp.eq.s32.totalorder %s286_s29, 0  ;;  %p300_p2 = scmp.eq.s32.totalorder %s1786_s25, 1 }
   0xa   : > { %p305_p3 = scmp.ne.s32.totalorder %s1673_s22, %s1669_s21  ;;  %p306_p4 = scmp.eq.s32.totalorder %s1352_s26, 1 }
   0xb   : > { %s1801_s30 = scalar_select %p287_p1, %s1677_s23, %s289_s28  }
   0xc   : > { %p1803_p5 = por %p300_p2, %p299_p0  ;;  %p1807_p6 = por %p306_p4, %p305_p3 }
   0xd   : > { %p1355_p7 = scmp.ge.s32.totalorder %s1681_s24, 1  ;;  %p364_p8 = scmp.lt.s32.totalorder %s1681_s24, 3 }
   0xf   : > { %p365_p9 = pnand %p1355_p7, %p364_p8 }
  0x10   : > { %p405_p10 = scmp.lt.s32.totalorder (!%p365_p9), %s1786_s25, 1  ;;  %vm411_vm0 = vcmask (!%p365_p9), 261120   ;;  %s2047_s0 = sld [smem:[#allocation6_spill]] (!%p365_p9)  ;;  %v1683_v8 = vmov (!%p365_p9), 0.0   ;;  %vm1684_vm1 = vmmov (!%p365_p9), 0   ;;  %vm506_vm2 = vcmask (!%p365_p9), 64512  }
  0x11   : > { %368 = sbr.rel (%p365_p9) target bundleno = 2632 (0xa48), region = 68  ;;  %s2048_s1 = sld [smem:[#allocation7_spill]] (!%p365_p9)  ;;  %1434 = vmatprep.subr.bf16.mxu0 (!%p365_p9), %v1683_v8  ;;  %1438 = vmatprep.mubr.msk.bf16.mxu0 (!%p365_p9), %vm1684_vm1, %v1683_v8  ;;  %v1358_v14 = vld [vmem:[%s2034_s4] ss:$0 sm:$0xff] (!%p365_p9)  ;;  %vm570_vm3 = vcmask (!%p365_p9), 1043456   ;;  %vm615_vm4 = vcmask (!%p365_p9), 60416  }
  0x12   : > { %1454 = vmatprep.subr.bf16.mxu1 (!%p365_p9), %v1683_v8  ;;  %1456 = vmatprep.mubr.msk.bf16.mxu1 (!%p365_p9), %vm1684_vm1, %v1683_v8  ;;  %v1359_v16 = vld [vmem:[%s2035_s5] ss:$0 sm:$0xff] (!%p365_p9)  ;;  %s1686_s20 = smov (!%p365_p9), 96   ;;  %s1687_s26 = smov (!%p365_p9), 88   ;;  %vm734_vm5 = vcmask (!%p365_p9), 126016   ;;  %vm853_vm6 = vcmask (!%p365_p9), 191616  }
  0x13   : > { %s1688_s28 = smov (!%p365_p9), 80   ;;  %s1689_s29 = smov (!%p365_p9), 112   ;;  %vm972_vm7 = vcmask (!%p365_p9), 257216  }
  0x14   : > { %s1692_s17 = smov (!%p365_p9), 64   ;;  %s1693_s18 = smov (!%p365_p9), 56  }
  0x17   : > { %v1581_v7 = vld [vmem:[%s2048_s1] sm:$0xff] (!%p365_p9)   ;;  %v1582_v9 = vld [vmem:[%s2048_s1 + $0x8] sm:$0xff] (!%p365_p9)  }
  0x18   : > { %s406_s15 = scalar_select %p405_p10, %s1786_s25, 1  ;;  %1435 = vmatpush3.bf16.msra.mxu0 %v1581_v7 }
  0x19   : > { %1436 = vmatprep.subr.bf16.mxu0 %v1683_v8 }
  0x1a   : > { %s1357_s16 = sshll.u32 %s406_s15, 3  ;;  %s1690_s15 = smov 72  }
  0x1b   : > { %s408_s19 = scalar_lea.vmem %s2047_s0, %s1357_s16  ;;  %s1691_s16 = smov 104  }
  0x1c   : > { %v1818_v0 = vld [vmem:[%s408_s19] sm:$0xff]  ;;  %1437 = vmatpush3.bf16.msra.mxu0 %v1582_v9  ;;  %s1685_s19 = smov 120  }
  0x1d   : > { %v412_v1 = vsel %vm411_vm0, %v1818_v0, 0.0  ;;  %1442 = vmatprep.subr.bf16.mxu0 %v1683_v8 }
  0x1e   : > { %413 = vadd.xlane.f32.xlu0 %v412_v1 }
  0xab   : > { %v414_v2 = vpop.xlane.xlu0 %413 }
  0xac   : > { %v416_v3 = vmul.f32 0.03125, %v414_v2 }
  0xae   : > { %v417_v4 = vsub.f32 %v1818_v0, %v416_v3 }
  0xb0   : > { %v418_v5 = vmul.f32 %v417_v4, %v417_v4 }
  0xb2   : > { %v419_v6 = vsel %vm411_vm0, %v418_v5, 0.0 }
  0xb3   : > { %420 = vadd.xlane.f32.xlu0 %v419_v6 }
 0x140   : > { %v421_v10 = vpop.xlane.xlu0 %420 }
 0x141   : > { %v422_v11 = vmul.f32 0.03125, %v421_v10 }
 0x143   : > { %v423_v12 = vadd.f32 1e-05, %v422_v11 }
 0x145   : > { %1595 = vrsqrt.f32 %v423_v12 }
 0x14f   : > { %v1596_v13 = vpop.eup %1595 }
 0x150   : > { %v425_v15 = vmul.f32 %v1596_v13, %v417_v4 }
 0x152   : > { %v433_v17 = vmul.f32 %v1358_v14, %v425_v15 }
 0x154   : > { %v441_v18 = vadd.f32 %v1359_v16, %v433_v17 }
 0x156   : > { %v442_v19 = vpack.c.bf16 %v441_v18, %v441_v18 }
 0x158   : > { %1439 = vmatmul.mubr.msk.bf16.vlgmr.msra.gmra.mrb[0].mxu0 %vm411_vm0, %v442_v19 }
 0x159   : > { %1444 = vmatprep.mubr.msk.bf16.mxu0 %vm1684_vm1, %v1683_v8 }
 0x22b   : > { %v496_v20 = vpop.f32.mrb[0].mxu0 }
 0x22c   : > { %v1847_v21 = vpack.c.bf16 %v496_v20, %v496_v20  ;;  %v1440_v22 = vpop.f32.mrb[1].mxu0 }
 0x22d   : > { %v499_v23 = vpop.f32.mrb[2].mxu0 }
 0x22e   : > { %617 = vrot.lane.b32.xlu0 %v1847_v21, %s1685_s19  ;;  %504 = vrot.lane.b32.xlu1 %v1847_v21, %s1686_s20  ;;  %v1441_v24 = vpop.f32.mrb[3].mxu0  ;;  %s1694_s19 = smov 48   ;;  %s1695_s20 = smov 40  }
 0x232   : > { %619 = vrot.lane.b32.xlu1 %v1847_v21, %s1687_s26  ;;  %s1696_s26 = smov 8  }
 0x236   : > { %738 = vrot.lane.b32.xlu1 %v1847_v21, %s1688_s28  ;;  %s1699_s28 = smov [#allocation3]  }
 0x23a   : > { %736 = vrot.lane.b32.xlu1 %v1847_v21, %s1689_s29  ;;  %s1623_s29 = sshll.u32 %s1699_s28, 4  ;;  %s1624_s29 = int_to_ptr.vmem [resolvable:$false] %s1623_s29 }
 0x23b   : > { %s1625_s1 = scalar_lea.vmem %s1624_s29, 256 }
 0x23e   : > { %857 = vrot.lane.b32.xlu1 %v1847_v21, %s1690_s15  ;;  %s1394_s15 = sshll.u32 %s1786_s25, 7 }
 0x23f   : > { %s1987_s0 = scalar_lea.hbm %s2042_s12, %s1394_s15 }
 0x242   : > { %855 = vrot.lane.b32.xlu1 %v1847_v21, %s1691_s16 }
 0x2a0   : > { %v505_v25 = vpop.permute.xlu1 %504  ;;  %v618_v30 = vpop.permute.xlu0 %617 }
 0x2a1   : > { %v511_v26 = vsel %vm506_vm2, %v505_v25, 0 }
 0x2a2   : > { %1443 = vmatpush3.bf16.xpose.msra.mxu0 %v511_v26 }
 0x2a3   : > { %1448 = vmatprep.subr.bf16.mxu0 %v1683_v8 }
 0x2a4   : > { %v620_v27 = vpop.permute.xlu1 %619 }
 0x2a5   : > { %v625_v28 = vsel %vm506_vm2, %v620_v27, 0 }
 0x2a6   : > { %1455 = vmatpush3.bf16.xpose.msra.mxu1 %v625_v28 }
 0x2a7   : > { %1466 = vmatprep.subr.bf16.mxu1 %v1683_v8 }
 0x2a8   : > { %v739_v29 = vpop.permute.xlu1 %738 }
 0x2a9   : > { %1445 = vmatmul.mubr.msk.bf16.vlgmr.msra.gmra.mrb[4].mxu0 %vm506_vm2, %v1847_v21  ;;  %v744_v32 = vsel %vm506_vm2, %v739_v29, 0 }
 0x2aa   : > { %1450 = vmatprep.mubr.msk.bf16.mxu0 %vm1684_vm1, %v1683_v8 }
 0x2ac   : > { %v737_v31 = vpop.permute.xlu1 %736 }
 0x2ad   : > { %1457 = vmatmul.mubr.msk.bf16.vlgmr.msra.gmra.mrb[0].mxu1 %vm506_vm2, %v618_v30 }
 0x2ae   : > { %1467 = vmatpush3.bf16.xpose.msra.mxu1 %v744_v32  ;;  %1468 = vmatprep.mubr.msk.bf16.mxu1 %vm1684_vm1, %v1683_v8 }
 0x2af   : > { %1478 = vmatprep.subr.bf16.mxu1 %v1683_v8 }
 0x2b0   : > { %v858_v33 = vpop.permute.xlu1 %857 }
 0x2b1   : > { %v863_v34 = vsel %vm506_vm2, %v858_v33, 0 }
 0x2b4   : > { %v856_v35 = vpop.permute.xlu1 %855 }
 0x2b5   : > { %1469 = vmatmul.mubr.msk.bf16.vlgmr.msra.gmra.mrb[4].mxu1 %vm506_vm2, %v737_v31 }
 0x2b6   : > { %1479 = vmatpush3.bf16.xpose.msra.mxu1 %v863_v34  ;;  %1480 = vmatprep.mubr.msk.bf16.mxu1 %vm1684_vm1, %v1683_v8 }
 0x2b7   : > { %1490 = vmatprep.subr.bf16.mxu1 %v1683_v8 }
 0x2bd   : > { %1481 = vmatmul.mubr.msk.bf16.vlgmr.msra.gmra.mrb[8].mxu1 %vm506_vm2, %v856_v35 }
 0x2be   : > { %1494 = vmatprep.mubr.msk.bf16.mxu1 %vm1684_vm1, %v1683_v8 }
 0x37c   : > { %v547_v36 = vpop.f32.mrb[4].mxu0 }
 0x37d   : > { %v1446_v37 = vpop.f32.mrb[5].mxu0  ;;  %v553_v38 = vsel %vm506_vm2, %v547_v36, -inf }
 0x37e   : > { %554 = vmax.xlane.f32.xlu1 %v553_v38  ;;  %v550_v39 = vpop.f32.mrb[6].mxu0 }
 0x37f   : > { %v1447_v40 = vpop.f32.mrb[7].mxu0 }
 0x380   : > { %v661_v41 = vpop.f32.mrb[0].mxu1 }
 0x381   : > { %v1458_v42 = vpop.f32.mrb[1].mxu1  ;;  %v667_v43 = vsel %vm506_vm2, %v661_v41, -inf }
 0x382   : > { %668 = vmax.xlane.f32.xlu0 %v667_v43  ;;  %v664_v44 = vpop.f32.mrb[2].mxu1 }
 0x383   : > { %v1459_v45 = vpop.f32.mrb[3].mxu1 }
 0x388   : > { %v780_v46 = vpop.f32.mrb[4].mxu1 }
 0x389   : > { %v1470_v47 = vpop.f32.mrb[5].mxu1  ;;  %v786_v48 = vsel %vm506_vm2, %v780_v46, -inf }
 0x38a   : > { %v783_v49 = vpop.f32.mrb[6].mxu1  ;;  %787 = vmax.xlane.f32.xlu1 %v786_v48  ;;  %v1583_v48 = vld [vmem:[%s2032_s2] sm:$0xff]  }
 0x38b   : > { %v1471_v50 = vpop.f32.mrb[7].mxu1  ;;  %1491 = vmatpush3.bf16.msra.mxu1 %v1583_v48 }
 0x38c   : > { %v1584_v50 = vld [vmem:[%s2032_s2 + $0x8] sm:$0xff]   ;;  %1492 = vmatprep.subr.bf16.mxu1 %v1683_v8 }
 0x38f   : > { %1493 = vmatpush3.bf16.msra.mxu1 %v1584_v50 }
 0x390   : > { %v899_v51 = vpop.f32.mrb[8].mxu1  ;;  %1506 = vmatprep.subr.bf16.mxu1 %v1683_v8 }
 0x391   : > { %v1482_v52 = vpop.f32.mrb[9].mxu1  ;;  %v905_v53 = vsel %vm506_vm2, %v899_v51, -inf }
 0x392   : > { %906 = vmax.xlane.f32.xlu0 %v905_v53  ;;  %v902_v54 = vpop.f32.mrb[10].mxu1 }
 0x393   : > { %v1483_v55 = vpop.f32.mrb[11].mxu1 }
 0x40b   : > { %v555_v56 = vpop.xlane.xlu1 %554 }
 0x40c   : > { %v556_v57 = vsub.f32 %v547_v36, %v555_v56 }
 0x40e   : > { %v557_v58 = vmul.f32 1.442695, %v556_v57 }
 0x40f   : > { %v669_v59 = vpop.xlane.xlu0 %668 }
 0x410   : > { %1597 = vpow2.f32 %v557_v58  ;;  %v670_v60 = vsub.f32 %v661_v41, %v669_v59 }
 0x412   : > { %v671_v61 = vmul.f32 1.442695, %v670_v60 }
 0x414   : > { %1599 = vpow2.f32 %v671_v61 }
 0x417   : > { %v788_v9 = vpop.xlane.xlu1 %787 }
 0x418   : > { %v789_v10 = vsub.f32 %v780_v46, %v788_v9 }
 0x41a   : > { %v1598_v62 = vpop.eup %1597  ;;  %v790_v11 = vmul.f32 1.442695, %v789_v10 }
 0x41b   : > { %v559_v63 = vsel %vm506_vm2, %v1598_v62, 0.0 }
 0x41c   : > { %560 = vadd.xlane.f32.xlu1 %v559_v63 }
 0x41e   : > { %v1600_v1 = vpop.eup %1599 }
 0x41f   : > { %v907_v2 = vpop.xlane.xlu0 %906  ;;  %v673_v3 = vsel %vm506_vm2, %v1600_v1, 0.0 }
 0x420   : > { %v908_v4 = vsub.f32 %v899_v51, %v907_v2  ;;  %674 = vadd.xlane.f32.xlu0 %v673_v3 }
 0x422   : > { %v909_v5 = vmul.f32 1.442695, %v908_v4 }
 0x424   : > { %1601 = vpow2.f32 %v909_v5 }
 0x425   : > { %1603 = vpow2.f32 %v790_v11 }
 0x42d   : > { %565 = vrot.lane.b32.xlu1 %v1847_v21, %s1692_s17  ;;  %s1697_s17 = smov 16  }
 0x42e   : > { %v1602_v6 = vpop.eup %1601 }
 0x42f   : > { %v911_v7 = vsel %vm506_vm2, %v1602_v6, 0.0  ;;  %v1604_v12 = vpop.eup %1603 }
 0x430   : > { %912 = vadd.xlane.f32.xlu0 %v911_v7  ;;  %v792_v13 = vsel %vm506_vm2, %v1604_v12, 0.0 }
 0x446   : > { %679 = vrot.lane.b32.xlu0 %v1847_v21, %s1693_s18  ;;  %s1698_s18 = smov 24  }
 0x451   : > { %793 = vadd.xlane.f32.xlu1 %v792_v13 }
 0x462   : > { %798 = vrot.lane.b32.xlu1 %v1847_v21, %s1694_s19 }
 0x466   : > { %917 = vrot.lane.b32.xlu1 %v1847_v21, %s1695_s20  ;;  %s402_s20 = sand.u32 1, %s1673_s22  }
 0x467   : > { %s1280_s25 = scalar_lea.sflag [#allocation4], %s402_s20 }
 0x4a9   : > { %v561_v14 = vpop.xlane.xlu1 %560 }
 0x4aa   : > { %1605 = vrcp.f32 %v561_v14 }
 0x4ad   : > { %v566_v15 = vpop.permute.xlu1 %565  ;;  %v675_v17 = vpop.xlane.xlu0 %674 }
 0x4ae   : > { %v572_v16 = vsel %vm570_vm3, %v566_v15, 0  ;;  %1607 = vrcp.f32 %v675_v17  ;;  %v1585_v15 = vld [vmem:[%s2038_s8] sm:$0xff]  }
 0x4af   : > { %1449 = vmatpush3.bf16.msra.mxu0 %v572_v16 }
 0x4b0   : > { %1460 = vmatprep.subr.bf16.mxu0 %v1683_v8 }
 0x4b4   : > { %v1606_v18 = vpop.eup %1605 }
 0x4b5   : > { %v563_v19 = vmul.f32 %v1606_v18, %v1598_v62 }
 0x4b7   : > { %v564_v20 = vpack.c.bf16 %v563_v19, %v563_v19 }
 0x4b8   : > { %v1608_v21 = vpop.eup %1607 }
 0x4b9   : > { %1451 = vmatmul.mubr.msk.bf16.vlgmr.msra.gmra.mrb[8].mxu0 %vm506_vm2, %v564_v20  ;;  %v677_v23 = vmul.f32 %v1608_v21, %v1600_v1  ;;  %v1374_v1 = vld [vmem:[%s2033_s3] ss:$0 sm:$0xff] }
 0x4ba   : > { %1462 = vmatprep.mubr.msk.bf16.mxu0 %vm1684_vm1, %v1683_v8  ;;  %v1378_v20 = vld [vmem:[%s2036_s6] ss:$0 sm:$0xff] }
 0x4bb   : > { %v678_v26 = vpack.c.bf16 %v677_v23, %v677_v23 }
 0x4bd   : > { %v913_v22 = vpop.xlane.xlu0 %912 }
 0x4c1   : > { %v680_v24 = vpop.permute.xlu0 %679 }
 0x4c2   : > { %v685_v25 = vsel %vm570_vm3, %v680_v24, 0 }
 0x4c3   : > { %1461 = vmatpush3.bf16.msra.mxu0 %v685_v25 }
 0x4c4   : > { %1472 = vmatprep.subr.bf16.mxu0 %v1683_v8 }
 0x4c6   : > { %1463 = vmatmul.mubr.msk.bf16.vlgmr.msra.gmra.mrb[12].mxu0 %vm506_vm2, %v678_v26  ;;  %v1587_v26 = vld [vmem:[%s2040_s10] sm:$0xff]  }
 0x4c7   : > { %1474 = vmatprep.mubr.msk.bf16.mxu0 %vm1684_vm1, %v1683_v8 }
 0x4de   : > { %v794_v27 = vpop.xlane.xlu1 %793 }
 0x4df   : > { %1609 = vrcp.f32 %v794_v27  ;;  %v1588_v27 = vld [vmem:[%s2040_s10 + $0x8] sm:$0xff]  }
 0x4e0   : > { %1611 = vrcp.f32 %v913_v22  ;;  %v1379_v22 = vld [vmem:[%s2037_s7] ss:$0 sm:$0xff] }
 0x4e2   : > { %v799_v28 = vpop.permute.xlu1 %798 }
 0x4e3   : > { %v804_v29 = vsel %vm570_vm3, %v799_v28, 0  ;;  %v1589_v28 = vld [vmem:[%s2040_s10 + $0x10] sm:$0xff]  }
 0x4e4   : > { %1473 = vmatpush3.bf16.msra.mxu0 %v804_v29  ;;  %v1590_v29 = vld [vmem:[%s2040_s10 + $0x18] sm:$0xff]  }
 0x4e5   : > { %1484 = vmatprep.subr.bf16.mxu0 %v1683_v8 }
 0x4e6   : > { %v918_v32 = vpop.permute.xlu1 %917 }
 0x4e7   : > { %v923_v35 = vsel %vm570_vm3, %v918_v32, 0  ;;  %v1593_v32 = vld [vmem:[%s2040_s10 + $0x30] sm:$0xff]  }
 0x4e9   : > { %v1610_v30 = vpop.eup %1609 }
 0x4ea   : > { %v796_v31 = vmul.f32 %v1610_v30, %v1604_v12  ;;  %v1612_v34 = vpop.eup %1611  ;;  %v1591_v30 = vld [vmem:[%s2040_s10 + $0x20] sm:$0xff]  }
 0x4eb   : > { %v915_v36 = vmul.f32 %v1612_v34, %v1602_v6  ;;  %v1380_v34 = vld [vmem:[%s2039_s9] ss:$0 sm:$0xff] }
 0x4ec   : > { %v797_v33 = vpack.c.bf16 %v796_v31, %v796_v31  ;;  %v1592_v31 = vld [vmem:[%s2040_s10 + $0x28] sm:$0xff]  }
 0x4ed   : > { %v916_v37 = vpack.c.bf16 %v915_v36, %v915_v36 }
 0x4ee   : > { %1475 = vmatmul.mubr.msk.bf16.vlgmr.msra.gmra.mrb[16].mxu0 %vm506_vm2, %v797_v33  ;;  %v1594_v33 = vld [vmem:[%s2040_s10 + $0x38] sm:$0xff]  }
 0x4ef   : > { %1485 = vmatpush3.bf16.msra.mxu0 %v923_v35  ;;  %1486 = vmatprep.mubr.msk.bf16.mxu0 %vm1684_vm1, %v1683_v8 }
 0x4f0   : > { %1498 = vmatprep.subr.bf16.mxu0 %v1683_v8 }
 0x4f6   : > { %1487 = vmatmul.mubr.msk.bf16.vlgmr.msra.gmra.mrb[20].mxu0 %vm506_vm2, %v916_v37 }
 0x4f7   : > { %1502 = vmatprep.mubr.msk.bf16.mxu0 %vm1684_vm1, %v1683_v8  ;;  %1499 = vmatpush3.bf16.msra.mxu0 %v1585_v15 }
 0x4f8   : > { %1500 = vmatprep.subr.bf16.mxu0 %v1683_v8 }
 0x58c   : > { %v608_v38 = vpop.f32.mrb[8].mxu0 }
 0x58d   : > { %v614_v39 = vpack.c.bf16 %v608_v38, %v608_v38  ;;  %v1452_v40 = vpop.f32.mrb[9].mxu0 }
 0x58e   : > { %v611_v41 = vpop.f32.mrb[10].mxu0 }
 0x58f   : > { %616 = vst.msk [vmem:[#allocation2] sm:$0xf] %vm615_vm4, %v614_v39  ;;  %v1453_v42 = vpop.f32.mrb[11].mxu0 }
 0x599   : > { %v721_v43 = vpop.f32.mrb[12].mxu0 }
 0x59a   : > { %v1397_v44 = vpack.c.bf16 %v721_v43, %v721_v43  ;;  %v1464_v45 = vpop.f32.mrb[13].mxu0 }
 0x59b   : > { %v724_v46 = vpop.f32.mrb[14].mxu0 }
 0x59c   : > { %731 = vrot.lane.b32.xlu0 %v1397_v44, %s1696_s26  ;;  %v1465_v47 = vpop.f32.mrb[15].mxu0  ;;  %s1356_s26 = sshll.u32 %s402_s20, 3 }
 0x59d   : > { %s404_s16 = scalar_lea.vmem [#allocation3], %s1356_s26 }
 0x5c1   : > { %v840_v49 = vpop.f32.mrb[16].mxu0 }
 0x5c2   : > { %v1398_v51 = vpack.c.bf16 %v840_v49, %v840_v49  ;;  %v1476_v52 = vpop.f32.mrb[17].mxu0 }
 0x5c3   : > { %v843_v53 = vpop.f32.mrb[18].mxu0 }
 0x5c4   : > { %850 = vrot.lane.b32.xlu1 %v1398_v51, %s1697_s17  ;;  %v1477_v54 = vpop.f32.mrb[19].mxu0  ;;  %s1293_s17 = sshll.u32 %s404_s16, 4  ;;  %s1989_s17 = int_to_ptr.vmem [resolvable:$true] %s1293_s17 }
 0x5c5   : > { %s1619_s26 = scalar_lea.vmem %s1989_s17, 128  ;;  %p1626_p0 = scmp.lt.s32.totalorder %s1989_s17, %s1624_s29 }
 0x5c6   : > { %p1620_p11 = scmp.ne.s32.totalorder %s1989_s17, %s1619_s26  ;;  %p1627_p1 = scmp.lt.s32.totalorder %s1625_s1, %s1619_s26 }
 0x5c8   : > { %p1621_p12 = pnand %p1620_p11, %p1803_p5  ;;  %p1628_p2 = por %p1627_p1, %p1626_p0 }
 0x5c9   : > { %v959_v55 = vpop.f32.mrb[20].mxu0 }
 0x5ca   : > { %v1399_v56 = vpack.c.bf16 %v959_v55, %v959_v55  ;;  %v1488_v57 = vpop.f32.mrb[21].mxu0  ;;  %p1622_p13 = pneg %p1621_p12 }
 0x5cb   : > { %v962_v58 = vpop.f32.mrb[22].mxu0 }
 0x5cc   : > { %969 = vrot.lane.b32.xlu0 %v1399_v56, %s1698_s18  ;;  %v1489_v59 = vpop.f32.mrb[23].mxu0  ;;  %p1629_p3 = pnand %p1628_p2, %p1622_p13 }
 0x60e   : > { %v732_v60 = vpop.permute.xlu0 %731 }
 0x60f   : > { %735 = vst.msk [vmem:[#allocation2] sm:$0xf] %vm734_vm5, %v732_v60 }
 0x636   : > { %v851_v61 = vpop.permute.xlu1 %850 }
 0x637   : > { %854 = vst.msk [vmem:[#allocation2] sm:$0xf] %vm853_vm6, %v851_v61 }
 0x63e   : > { %v970_v62 = vpop.permute.xlu0 %969 }
 0x63f   : > { %973 = vst.msk [vmem:[#allocation2] sm:$0xf] %vm972_vm7, %v970_v62 }
 0x646   : > { %v974_v63 = vld [vmem:[#allocation2] sm:$0xf] }
 0x647   : > { %1495 = vmatmul.mubr.msk.bf16.vlgmr.msra.gmra.mrb[12].mxu1 %vm411_vm0, %v974_v63 }
 0x648   : > { %1522 = vmatprep.mubr.msk.bf16.mxu1 %vm1684_vm1, %v1683_v8  ;;  %1507 = vmatpush3.bf16.msra.mxu1 %v1587_v26 }
 0x649   : > { %1508 = vmatprep.subr.bf16.mxu1 %v1683_v8 }
 0x64c   : > { %1509 = vmatpush3.bf16.msra.mxu1 %v1588_v27 }
 0x64d   : > { %1510 = vmatprep.subr.bf16.mxu1 %v1683_v8 }
 0x650   : > { %1511 = vmatpush3.bf16.msra.mxu1 %v1589_v28 }
 0x651   : > { %1512 = vmatprep.subr.bf16.mxu1 %v1683_v8 }
 0x654   : > { %1513 = vmatpush3.bf16.msra.mxu1 %v1590_v29 }
 0x655   : > { %1514 = vmatprep.subr.bf16.mxu1 %v1683_v8 }
 0x658   : > { %1515 = vmatpush3.bf16.msra.mxu1 %v1591_v30 }
 0x659   : > { %1516 = vmatprep.subr.bf16.mxu1 %v1683_v8 }
 0x65c   : > { %1517 = vmatpush3.bf16.msra.mxu1 %v1592_v31 }
 0x65d   : > { %1518 = vmatprep.subr.bf16.mxu1 %v1683_v8 }
 0x660   : > { %1519 = vmatpush3.bf16.msra.mxu1 %v1593_v32 }
 0x661   : > { %1520 = vmatprep.subr.bf16.mxu1 %v1683_v8 }
 0x664   : > { %1521 = vmatpush3.bf16.msra.mxu1 %v1594_v33 }
 0x71a   : > { %v1035_v2 = vpop.f32.mrb[12].mxu1 }
 0x71b   : > { %v1036_v3 = vadd.f32 %v1374_v1, %v1035_v2  ;;  %v1496_v4 = vpop.f32.mrb[13].mxu1  ;;  %v1384_v2 = vld [vmem:[%s2041_s11] ss:$0 sm:$0xff] }
 0x71c   : > { %v1038_v5 = vpop.f32.mrb[14].mxu1 }
 0x71d   : > { %v1924_v6 = vadd.f32 %v1036_v3, %v1818_v0  ;;  %v1497_v7 = vpop.f32.mrb[15].mxu1  ;;  %v1586_v0 = vld [vmem:[%s2038_s8 + $0x8] sm:$0xff]  }
 0x71e   : > { %1501 = vmatpush3.bf16.msra.mxu0 %v1586_v0 }
 0x71f   : > { %v1042_v9 = vsel %vm411_vm0, %v1924_v6, 0.0 }
 0x720   : > { %1043 = vadd.xlane.f32.xlu1 %v1042_v9 }
 0x7ad   : > { %v1044_v10 = vpop.xlane.xlu1 %1043 }
 0x7ae   : > { %v1045_v11 = vmul.f32 0.03125, %v1044_v10 }
 0x7b0   : > { %v1046_v12 = vsub.f32 %v1924_v6, %v1045_v11 }
 0x7b2   : > { %v1047_v13 = vmul.f32 %v1046_v12, %v1046_v12 }
 0x7b4   : > { %v1048_v14 = vsel %vm411_vm0, %v1047_v13, 0.0 }
 0x7b5   : > { %1049 = vadd.xlane.f32.xlu0 %v1048_v14 }
 0x842   : > { %v1050_v16 = vpop.xlane.xlu0 %1049 }
 0x843   : > { %v1051_v17 = vmul.f32 0.03125, %v1050_v16 }
 0x845   : > { %v1052_v18 = vadd.f32 1e-05, %v1051_v17 }
 0x847   : > { %1613 = vrsqrt.f32 %v1052_v18 }
 0x851   : > { %v1614_v19 = vpop.eup %1613 }
 0x852   : > { %v1054_v21 = vmul.f32 %v1614_v19, %v1046_v12 }
 0x854   : > { %v1062_v23 = vmul.f32 %v1378_v20, %v1054_v21 }
 0x856   : > { %v1070_v24 = vadd.f32 %v1379_v22, %v1062_v23 }
 0x858   : > { %v1071_v25 = vpack.c.bf16 %v1070_v24, %v1070_v24 }
 0x85a   : > { %1503 = vmatmul.mubr.msk.bf16.vlgmr.msra.gmra.mrb[24].mxu0 %vm411_vm0, %v1071_v25 }
 0x92d   : > { %v1132_v35 = vpop.f32.mrb[24].mxu0 }
 0x92e   : > { %v1133_v36 = vadd.f32 %v1380_v34, %v1132_v35  ;;  %v1504_v37 = vpop.f32.mrb[25].mxu0 }
 0x92f   : > { %v1135_v38 = vpop.f32.mrb[26].mxu0 }
 0x930   : > { %v1139_v39 = vmul.f32 0.70710677, %v1133_v36  ;;  %v1505_v40 = vpop.f32.mrb[27].mxu0  ;;  %v1138_v61 = vmul.f32 0.5, %v1133_v36 }
 0x932   : > { %v1140_v41 = vand.u32 2147483647, %v1139_v39  ;;  %vm1160_vm8 = vcmp.ge.f32.partialorder %v1139_v39, 0.0 }
 0x934   : > { %v1141_v42 = vmul.f32 0.3275911, %v1140_v41  ;;  %v1154_v8 = vsub.f32 0.0, %v1140_v41 }
 0x936   : > { %v1142_v43 = vadd.f32 1.0, %v1141_v42  ;;  %v1155_v45 = vmul.f32 %v1154_v8, %v1140_v41 }
 0x938   : > { %1615 = vrcp.f32 %v1142_v43  ;;  %v1156_v48 = vmul.f32 1.442695, %v1155_v45 }
 0x93a   : > { %1617 = vpow2.f32 %v1156_v48 }
 0x942   : > { %v1616_v44 = vpop.eup %1615 }
 0x943   : > { %v1145_v46 = vmul.f32 1.0614054, %v1616_v44 }
 0x944   : > { %v1618_v56 = vpop.eup %1617 }
 0x945   : > { %v1146_v47 = vadd.f32 -1.4531521, %v1145_v46 }
 0x947   : > { %v1147_v49 = vmul.f32 %v1616_v44, %v1146_v47 }
 0x949   : > { %v1148_v50 = vadd.f32 1.4214138, %v1147_v49 }
 0x94b   : > { %v1149_v51 = vmul.f32 %v1616_v44, %v1148_v50 }
 0x94d   : > { %v1150_v52 = vadd.f32 -0.28449672, %v1149_v51 }
 0x94f   : > { %v1151_v53 = vmul.f32 %v1616_v44, %v1150_v52 }
 0x951   : > { %v1152_v54 = vadd.f32 0.2548296, %v1151_v53 }
 0x953   : > { %v1153_v55 = vmul.f32 %v1616_v44, %v1152_v54 }
 0x955   : > { %v1158_v57 = vmul.f32 %v1618_v56, %v1153_v55 }
 0x957   : > { %v1159_v58 = vsub.f32 1.0, %v1158_v57 }
 0x959   : > { %v1161_v59 = vsub.f32 0.0, %v1159_v58 }
 0x95b   : > { %v1162_v60 = vsel %vm1160_vm8, %v1159_v58, %v1161_v59 }
 0x95c   : > { %v1163_v62 = vadd.f32 1.0, %v1162_v60 }
 0x95e   : > { %v1164_v63 = vmul.f32 %v1163_v62, %v1138_v61 }
 0x960   : > { %v1165_v1 = vpack.c.bf16 %v1164_v63, %v1164_v63 }
 0x962   : > { %1523 = vmatmul.mubr.bf16.vlgmr.msra.gmra.mrb[16].mxu1 %v1165_v1 }
 0xa35   : > { %v1271_v3 = vpop.f32.mrb[16].mxu1 }
 0xa36   : > { %v1272_v4 = vadd.f32 %v1384_v2, %v1271_v3  ;;  %v1524_v5 = vpop.f32.mrb[17].mxu1 }
 0xa37   : > { %v1274_v7 = vpop.f32.mrb[18].mxu1 }
 0xa38   : > { %v1277_v9 = vadd.f32 %v1272_v4, %v1924_v6  ;;  %v1525_v10 = vpop.f32.mrb[19].mxu1 }
 0xa3a   : > { %1278 = vst.msk [vmem:[%s404_s16] sm:$0xff] %vm411_vm0, %v1277_v9 }
 0xa3b   : > { %1632 = shalt.err (!%p1629_p3)
}
 0xa3c   : > { %s1633_s20 = scalar_lea.hbm %s1987_s0, 128  ;;  %s1637_s18 = scalar_lea.hbm %s2042_s12, 256 }
 0xa3d   : > { %p1634_p4 = scmp.ne.s32.totalorder %s1987_s0, %s1633_s20  ;;  %p1638_p9 = scmp.lt.u32.totalorder %s1987_s0, %s2042_s12 }
 0xa3e   : > { %p1639_p10 = scmp.lt.u32.totalorder %s1637_s18, %s1633_s20  ;;  %p1641_p12 = scmp.lt.u32.totalorder %s1633_s20, %s1987_s0 }
 0xa3f   : > { %p1635_p7 = pnand %p1634_p4, %p1803_p5 }
 0xa40   : > { %p1640_p11 = por %p1639_p10, %p1638_p9 }
 0xa41   : > { %p1636_p8 = pneg %p1635_p7 }
 0xa42   : > { %p1642_p13 = por %p1641_p12, %p1640_p11 }
 0xa44   : > { %p1643_p0 = pnand %p1642_p13, %p1636_p8 }
 0xa46   : > { %1646 = shalt.err (!%p1643_p0)
}
 0xa47   : > { %1526 = dma.vmem_to_hbm [thread:$0]  (%p1803_p5), %s1989_s17, 128, %s1987_s0, %s1280_s25  }
 0xa48 PF: > { %p1532_p1 = scmp.ge.s32.totalorder %s1681_s24, 2  ;;  %s1305_s1 = sand.u32 1, %s1669_s21  }
 0xa49   : > { %s1306_s26 = scalar_lea.sflag [#allocation4], %s1305_s1 }
 0xa4a   : > { %p1529_p2 = pnand %p1532_p1, %p1807_p6 }
 0xa4c   : > { %1664 = dma.done.wait (!%p1529_p2), %s1306_s26, 128  }
 0xa4d   : > { %1666 = vsyncadd (!%p1529_p2), %s1306_s26, 4294967168  ;;  %p22_p3 = scmp.ge.s32.totalorder %s1790_s27, 4   ;;  %s2049_s21 = smov %s1673_s22 }
 0xa4e   : > { %s2050_s22 = smov %s1677_s23  ;;  %s2051_s23 = smov %s1801_s30 }
 0xa4f   : > { %s2052_s24 = smov %s1790_s27  ;;  %24 = sbr.rel (!%p22_p3) target bundleno = 6 (0x6), region = 103 }
 0xa56   :  { %1311 = vsyncpa [#allocation4], 1 }
 0xa57   :  { %1313 = vsyncpa [#allocation4 + $0x1], 1 }

</bundles_post_ra>
